<compile_context>
chip_gen: v7x
topology: tpu7x:2x2x1
jax: 0.10.0
libtpu: 0.0.40
codegen_flags: <defaults>
</compile_context>

<pallas_src>
import functools

import jax
import jax.numpy as jnp
from jax.experimental import pallas as pl
from jax.experimental.pallas import tpu as pltpu

CATEGORY = 6  # matches GCELoss(category=6)


def _gce_kernel(pre_ref, tgt_ref, out_ref, *, q, scale, n_valid, block_n, c):
    i = pl.program_id(0)

    x = pre_ref[...].astype(jnp.float32)          # (C, block_n): classes on sublanes
    tgt = tgt_ref[...]                            # (1, block_n) int32

    # Numerically-stable softmax pieces along the class (sublane) axis.
    m = jnp.max(x, axis=0, keepdims=True)         # (1, block_n)
    e = jnp.exp(x - m)                            # (C, block_n)
    denom = jnp.sum(e, axis=0, keepdims=True)     # (1, block_n)

    # Gather the target-class numerator via a C-deep sublane select + reduce.
    # NOTE: out-of-range labels (e.g. ignore_index) are not supported, matching
    # the reference module (F.one_hot would reject them too).
    cls = jax.lax.broadcasted_iota(jnp.int32, (c, block_n), 0)
    e_t = jnp.sum(jnp.where(cls == tgt, e, 0.0), axis=0, keepdims=True)   # (1, block_n)

    # Exact divide (keeps the tight 1e-5/1e-6 test tolerances).
    p_t = e_t / denom                             # (1, block_n)

    if q == 0.5:
        pw = jnp.sqrt(p_t + 1e-5)                 # single EUP op instead of exp+log
    elif q == 1.0:
        pw = p_t + 1e-5
    else:
        pw = jnp.power(p_t + 1e-5, q)

    # Mask rows beyond N (ragged last block reads unspecified data). This MUST
    # stay a select applied before the reduction: NaN/Inf from garbage rows is
    # discarded by jnp.where, whereas a multiply-by-mask would propagate it.
    row = i * block_n + jax.lax.broadcasted_iota(jnp.int32, (1, block_n), 1)
    term = jnp.where(row < n_valid, (1.0 - pw) * scale, 0.0)   # (1, block_n)

    # Per-block partial sum, written into a lane-dense (1, 128) output tile.
    partial = jnp.sum(term)
    lane = jax.lax.broadcasted_iota(jnp.int32, (1, 128), 1)
    out_ref[...] = jnp.where(lane == 0, partial, 0.0)


def gce_loss(pre, target, q=0.5, category=CATEGORY, block_n=65536):
    """pre: (N, category) float; target: (N,) int labels. Returns scalar f32."""
    n, c = pre.shape
    assert c == category

    # ---- block sizing -------------------------------------------------------
    # Large blocks amortize the ~0.35 us/step pipeline overhead; clamp so the
    # double-buffered (8-sublane padded, block_n) f32 tiles stay far below the
    # 32 MiB default scoped VMEM even on v7x (64 MiB physical).
    block_n = max(128, min(int(block_n), 256 * 1024))
    block_n = (block_n // 128) * 128
    block_n = min(block_n, pl.cdiv(n, 128) * 128)      # never bigger than needed
    num_blocks = pl.cdiv(n, block_n)
    # v7x has 2 TensorCores; the "parallel" grid axis is what shards across
    # them, so keep >=2 blocks once N is large enough that halving the block
    # does not make it step-overhead bound again.
    if num_blocks == 1 and n > 32 * 1024:
        block_n = pl.cdiv(pl.cdiv(n, 2), 128) * 128
        num_blocks = pl.cdiv(n, block_n)

    # Class axis -> sublanes, batch axis -> lanes. No wrapper-side padding;
    # the kernel masks the ragged tail. allow_input_fusion lets XLA fuse this
    # relayout into the pallas_call operand when possible instead of
    # materializing pre_t in HBM.
    pre_t = jnp.transpose(pre, (1, 0))                    # (C, N)
    tgt = target.astype(jnp.int32).reshape(1, n)          # (1, N)

    scale = 1.0 / (float(q) * n * c)
    kernel = functools.partial(
        _gce_kernel, q=float(q), scale=scale, n_valid=n, block_n=block_n, c=c)

    partials = pl.pallas_call(
        kernel,
        out_shape=jax.ShapeDtypeStruct((1, num_blocks * 128), jnp.float32),
        grid=(num_blocks,),
        in_specs=[
            pl.BlockSpec((c, block_n), lambda i: (0, i)),   # (C, block_n) tile
            pl.BlockSpec((1, block_n), lambda i: (0, i)),   # (1, block_n) labels
        ],
        out_specs=pl.BlockSpec((1, 128), lambda i: (0, i)),  # lane-dense partials
        compiler_params=pltpu.CompilerParams(
            dimension_semantics=("parallel",),
            allow_input_fusion=[True, True],
        ),
    )(pre_t, tgt)

    # Tiny final reduce over num_blocks*128 partials (zeros except lane 0/block).
    return jnp.sum(partials)


# q / category / block_n drive Python-level specialization -> static.
gce_loss_jit = jax.jit(gce_loss, static_argnames=("q", "category", "block_n"))


def _gce_ref(pre, target, q=0.5, category=CATEGORY):
    p = jax.nn.softmax(pre.astype(jnp.float32), axis=-1)
    oh = jax.nn.one_hot(target, category, dtype=jnp.float32)
    return jnp.mean((oh - jnp.power(p + 1e-5, q)) * oh / q)


if __name__ == "__main__":
    key = jax.random.PRNGKey(0)
    k1, k2, k3, k4, k5, k6 = jax.random.split(key, 6)

    # Case 1: small batch, default q=0.5 (sqrt fast path), single ragged block.
    N = 8
    pre = jax.random.normal(k1, (N, CATEGORY), dtype=jnp.float32)
    target = jax.random.randint(k2, (N,), 0, CATEGORY, dtype=jnp.int32)
    out = jax.block_until_ready(gce_loss_jit(pre, target, q=0.5))
    ref = _gce_ref(pre, target, q=0.5)
    assert jnp.allclose(out, ref, rtol=1e-5, atol=1e-6), (out, ref)

    # Case 2: multi-block grid with unpadded ragged tail and general-q pow path.
    N2 = 300
    pre2 = jax.random.normal(k3, (N2, CATEGORY), dtype=jnp.float32)
    target2 = jax.random.randint(k4, (N2,), 0, CATEGORY, dtype=jnp.int32)
    out2 = jax.block_until_ready(gce_loss_jit(pre2, target2, q=0.7, block_n=128))
    ref2 = _gce_ref(pre2, target2, q=0.7)
    assert jnp.allclose(out2, ref2, rtol=1e-5, atol=1e-6), (out2, ref2)

    # Case 3: default (large) block sizing path, q=1.0 identity fast path.
    N3 = 1000
    pre3 = jax.random.normal(k5, (N3, CATEGORY), dtype=jnp.float32)
    target3 = jax.random.randint(k6, (N3,), 0, CATEGORY, dtype=jnp.int32)
    out3 = jax.block_until_ready(gce_loss_jit(pre3, target3, q=1.0))
    ref3 = _gce_ref(pre3, target3, q=1.0)
    assert jnp.allclose(out3, ref3, rtol=1e-5, atol=1e-6), (out3, ref3)

    print("KERNEL_OK")
</pallas_src>

<mosaic_0001>
module attributes {stable_mosaic.version = 11 : i64} {
  func.func @_gce_kernel(%arg0: i32, %arg1: memref<6x128xf32, #tpu.memory_space<vmem>>, %arg2: memref<1x128xi32, #tpu.memory_space<vmem>>, %arg3: memref<1x128xf32, #tpu.memory_space<vmem>>) attributes {dimension_semantics = [#tpu.dimension_semantics<parallel>], iteration_bounds = array<i64: 1>, scalar_prefetch = 0 : i64, scratch_operands = 0 : i64, tpu.core_type = #tpu.core_type<tc>, window_params = [{transform_indices = @transform_0, window_bounds = array<i64: 6, 128>}, {transform_indices = @transform_1, window_bounds = array<i64: 1, 128>}, {transform_indices = @transform_2, window_bounds = array<i64: 1, 128>}]} {
    %c0 = arith.constant 0 : index
    %c0_0 = arith.constant 0 : index
    %0 = vector.load %arg1[%c0, %c0_0] : memref<6x128xf32, #tpu.memory_space<vmem>>, vector<6x128xf32>
    %c0_1 = arith.constant 0 : index
    %c0_2 = arith.constant 0 : index
    %1 = vector.load %arg2[%c0_1, %c0_2] : memref<1x128xi32, #tpu.memory_space<vmem>>, vector<1x128xi32>
    %cst = arith.constant dense<0xFF800000> : vector<128xf32>
    %2 = vector.multi_reduction <maximumf>, %0, %cst [0] : vector<6x128xf32> to vector<128xf32>
    %3 = vector.shape_cast %2 : vector<128xf32> to vector<1x128xf32>
    %4 = vector.broadcast %3 : vector<1x128xf32> to vector<6x128xf32>
    %5 = arith.subf %0, %4 : vector<6x128xf32>
    %6 = math.exp %5 : vector<6x128xf32>
    %cst_3 = arith.constant dense<0.000000e+00> : vector<128xf32>
    %7 = vector.multi_reduction <add>, %6, %cst_3 [0] : vector<6x128xf32> to vector<128xf32>
    %8 = vector.shape_cast %7 : vector<128xf32> to vector<1x128xf32>
    %9 = tpu.iota {dimensions = array<i32: 0>} : vector<6x128xi32>
    %10 = vector.broadcast %1 : vector<1x128xi32> to vector<6x128xi32>
    %11 = arith.cmpi eq, %9, %10 : vector<6x128xi32>
    %cst_4 = arith.constant 0.000000e+00 : f32
    %12 = vector.broadcast %cst_4 : f32 to vector<6x128xf32>
    %13 = arith.select %11, %6, %12 : vector<6x128xi1>, vector<6x128xf32>
    %cst_5 = arith.constant dense<0.000000e+00> : vector<128xf32>
    %14 = vector.multi_reduction <add>, %13, %cst_5 [0] : vector<6x128xf32> to vector<128xf32>
    %15 = vector.shape_cast %14 : vector<128xf32> to vector<1x128xf32>
    %16 = arith.divf %15, %8 : vector<1x128xf32>
    %cst_6 = arith.constant 9.99999974E-6 : f32
    %17 = vector.broadcast %cst_6 : f32 to vector<1x128xf32>
    %18 = arith.addf %16, %17 : vector<1x128xf32>
    %19 = math.sqrt %18 : vector<1x128xf32>
    %c128_i32 = arith.constant 128 : i32
    %20 = arith.muli %arg0, %c128_i32 : i32
    %21 = tpu.iota {dimensions = array<i32: 1>} : vector<1x128xi32>
    %22 = vector.broadcast %20 : i32 to vector<1x128xi32>
    %23 = arith.addi %22, %21 : vector<1x128xi32>
    %c8_i32 = arith.constant 8 : i32
    %24 = vector.broadcast %c8_i32 : i32 to vector<1x128xi32>
    %25 = arith.cmpi slt, %23, %24 : vector<1x128xi32>
    %cst_7 = arith.constant 1.000000e+00 : f32
    %26 = vector.broadcast %cst_7 : f32 to vector<1x128xf32>
    %27 = arith.subf %26, %19 : vector<1x128xf32>
    %cst_8 = arith.constant 0.0416666679 : f32
    %28 = vector.broadcast %cst_8 : f32 to vector<1x128xf32>
    %29 = arith.mulf %27, %28 : vector<1x128xf32>
    %cst_9 = arith.constant 0.000000e+00 : f32
    %30 = vector.broadcast %cst_9 : f32 to vector<1x128xf32>
    %31 = arith.select %25, %29, %30 : vector<1x128xi1>, vector<1x128xf32>
    %32 = vector.shape_cast %31 : vector<1x128xf32> to vector<1x1x128xf32>
    %cst_10 = arith.constant dense<0.000000e+00> : vector<1xf32>
    %33 = vector.multi_reduction <add>, %32, %cst_10 [1, 2] : vector<1x1x128xf32> to vector<1xf32>
    %34 = vector.shape_cast %33 : vector<1xf32> to vector<1x1x1xf32>
    %35 = vector.extract %34[0, 0, 0] : f32 from vector<1x1x1xf32>
    %36 = tpu.iota {dimensions = array<i32: 1>} : vector<1x128xi32>
    %c0_i32 = arith.constant 0 : i32
    %37 = vector.broadcast %c0_i32 : i32 to vector<1x128xi32>
    %38 = arith.cmpi eq, %36, %37 : vector<1x128xi32>
    %cst_11 = arith.constant 0.000000e+00 : f32
    %39 = vector.broadcast %35 : f32 to vector<1x128xf32>
    %40 = vector.broadcast %cst_11 : f32 to vector<1x128xf32>
    %41 = arith.select %38, %39, %40 : vector<1x128xi1>, vector<1x128xf32>
    %c0_12 = arith.constant 0 : index
    %c0_13 = arith.constant 0 : index
    %42 = vector.load %arg3[%c0_12, %c0_13] : memref<1x128xf32, #tpu.memory_space<vmem>>, vector<1x128xf32>
    tpu.vector_store %arg3[%c0_12, %c0_13], %41 {strides = array<i32>} : memref<1x128xf32, #tpu.memory_space<vmem>>, vector<1x128xf32>,
    return
  }
  func.func @transform_0(%arg0: i32) -> (i32, i32) {
    %c0_i32 = arith.constant 0 : i32
    %c0_i32_0 = arith.constant 0 : i32
    return %c0_i32, %arg0 : i32, i32
  }
  func.func @transform_1(%arg0: i32) -> (i32, i32) {
    %c0_i32 = arith.constant 0 : i32
    %c0_i32_0 = arith.constant 0 : i32
    return %c0_i32, %arg0 : i32, i32
  }
  func.func @transform_2(%arg0: i32) -> (i32, i32) {
    %c0_i32 = arith.constant 0 : i32
    %c0_i32_0 = arith.constant 0 : i32
    return %c0_i32, %arg0 : i32, i32
  }
}

</mosaic_0001>

<bundles_post_ra>
// kernel: gce_loss.2
= control target key start
LH: loop header
LB: loop body
LE: loop exit
PB: predicated region body
PF: predicated region fallthrough
CT: control target
= control target key end

     0   :  { %vm19_vm0 = vcmask 1045504   ;;  %v37_v12 = vlaneseq  ;;  %vm71_vm5 = vcmask 1040384   ;;  %s126_s0 = inlined_call_operand.vmem [shape: f32[8,6], index: 0, kind: input, shape index: {}]   ;;  %s127_s1 = inlined_call_operand.vmem [shape: s32[8], index: 1, kind: input, shape index: {}]   ;;  %s128_s2 = inlined_call_operand.vmem [shape: f32[1,128], index: 2, kind: output, shape index: {}]  }
   0x1   :  { %v11_v0 = vld [vmem:[%s126_s0] sm:$0x3f] }
   0x2   :  { %v14_v1 = vld [vmem:[%s127_s1] sm:$0x1]  ;;  %13 = vst [vmem:[#allocation2] sm:$0xff] %v11_v0  ;;  %v38_v13 = vshrl.u32 %v37_v12, 7  ;;  %v64_v37 = vand.u32 127, %v37_v12 }
   0x3   :  { %16 = vst [vmem:[#allocation3] sm:$0x1] %v14_v1 }
   0x4   :  { %vm67_vm4 = vcmp.lt.s32.totalorder %v64_v37, 8  ;;  %vm82_vm6 = vcmp.eq.s32.totalorder %v64_v37, 0 }
   0x9   :  { %v17_v2 = vld [vmem:[#allocation2] sm:$0x3f] }
   0xa   :  { %v20_v3 = vsel %vm19_vm0, %v17_v2, -inf  ;;  %v90_v14 = vld [vmem:[#allocation3] ss:$0 sm:$0xff] }
   0xb   :  { %v21_v4 = vrot.slane %v20_v3, 4  ;;  %vm43_vm1 = vcmp.eq.s32.totalorder %v38_v13, %v90_v14 }
   0xd   :  { %v22_v5 = vmax.f32 %v20_v3, %v21_v4 }
   0xf   :  { %v23_v6 = vrot.slane %v22_v5, 2 }
  0x11   :  { %v24_v7 = vmax.f32 %v22_v5, %v23_v6 }
  0x13   :  { %v25_v8 = vrot.slane %v24_v7, 1 }
  0x15   :  { %v26_v9 = vmax.f32 %v24_v7, %v25_v8 }
  0x17   :  { %v27_v10 = vsub.f32 %v17_v2, %v26_v9 }
  0x19   :  { %v28_v11 = vmul.f32 1.442695, %v27_v10 }
  0x1b   :  { %93 = vpow2.f32 %v28_v11 }
  0x25   :  { %v94_v15 = vpop.eup %93 }
  0x26   :  { %v30_v16 = vsel %vm19_vm0, %v94_v15, 0.0  ;;  %v44_v17 = vsel %vm43_vm1, %v94_v15, 0.0 }
  0x27   :  { %v31_v18 = vrot.slane %v30_v16, 4  ;;  %v45_v19 = vsel %vm19_vm0, %v44_v17, 0.0 }
  0x28   :  { %v46_v20 = vrot.slane %v45_v19, 4 }
  0x29   :  { %v32_v21 = vadd.f32 %v31_v18, %v30_v16 }
  0x2a   :  { %v47_v22 = vadd.f32 %v46_v20, %v45_v19 }
  0x2b   :  { %v33_v23 = vrot.slane %v32_v21, 2 }
  0x2c   :  { %v48_v25 = vrot.slane %v47_v22, 2 }
  0x2d   :  { %v34_v24 = vadd.f32 %v33_v23, %v32_v21 }
  0x2e   :  { %v49_v28 = vadd.f32 %v48_v25, %v47_v22 }
  0x2f   :  { %v35_v26 = vrot.slane %v34_v24, 1 }
  0x30   :  { %v50_v29 = vrot.slane %v49_v28, 1 }
  0x31   :  { %v36_v27 = vadd.f32 %v35_v26, %v34_v24 }
  0x32   :  { %v51_v30 = vadd.f32 %v50_v29, %v49_v28 }
  0x33   :  { %95 = vrcp.f32 %v36_v27 }
  0x3d   :  { %v96_v31 = vpop.eup %95 }
  0x3e   :  { %v53_v32 = vmul.f32 %v96_v31, %v51_v30 }
  0x40   :  { %v54_v33 = vadd.f32 1e-05, %v53_v32 }
  0x42   :  { %97 = vrsqrt.f32 %v54_v33  ;;  %vm57_vm2 = vcmp.eq.f32.partialorder %v54_v33, inf  ;;  %v60_v35 = vand.u32 2147483648, %v54_v33  ;;  %vm59_vm3 = vcmp.eq.f32.partialorder %v54_v33, 0.0 }
  0x4c   :  { %v98_v34 = vpop.eup %97 }
  0x4d   :  { %v56_v36 = vmul.f32 %v98_v34, %v54_v33 }
  0x4f   :  { %v58_v38 = vsel %vm57_vm2, %v54_v33, %v56_v36 }
  0x50   :  { %v61_v39 = vsel %vm59_vm3, %v60_v35, %v58_v38 }
  0x51   :  { %v68_v40 = vsub.f32 1.0, %v61_v39 }
  0x53   :  { %v69_v41 = vmul.f32 0.041666668, %v68_v40 }
  0x55   :  { %v70_v42 = vsel %vm67_vm4, %v69_v41, 0.0 }
  0x56   :  { %v72_v43 = vsel %vm71_vm5, %v70_v42, 0.0 }
  0x57   :  { %73 = vadd.xlane.f32.xlu0 %v72_v43 }
  0xe4   :  { %v74_v44 = vpop.xlane.xlu0 %73 }
  0xe5   :  { %v75_v45 = vrot.slane %v74_v44, 4 }
  0xe7   :  { %v76_v46 = vadd.f32 %v75_v45, %v74_v44 }
  0xe9   :  { %v77_v47 = vrot.slane %v76_v46, 2 }
  0xeb   :  { %v78_v48 = vadd.f32 %v77_v47, %v76_v46 }
  0xed   :  { %v79_v49 = vrot.slane %v78_v48, 1 }
  0xef   :  { %v80_v50 = vadd.f32 %v79_v49, %v78_v48 }
  0xf1   :  { %91 = vpush %v80_v50 }
 0x122   :  { %s92_s0 = spop %91 }
 0x123   :  { %v83_v51 = vstv %s92_s0 }
 0x124   :  { %v84_v52 = vsel %vm82_vm6, %v83_v51, 0.0 }
 0x125   :  { %85 = vst [vmem:[%s128_s2] sm:$0x1] %v84_v52 }

</bundles_post_ra>
